<compile_context>
chip_gen: v7x
topology: tpu7x:2x2x1
jax: 0.10.0
libtpu: 0.0.40
codegen_flags: <defaults>
</compile_context>

<pallas_src>
import functools
import math

import jax
import jax.numpy as jnp
from jax.experimental import pallas as pl
from jax.experimental.pallas import tpu as pltpu

_LANES = 128
# 2048 sublanes x 128 lanes = 256K elements -> 1 MiB per f32 tile.
# in + out, double-buffered, is ~4 MiB: fits the default scoped VMEM on
# v5e (16 MiB), v6e (32 MiB) and v7x (32 MiB default / 64 MiB physical),
# so no explicit vmem_limit_bytes is needed.
_MAX_TILE_ROWS = 2048


def _drop_path_kernel(keep_prob, rand_ref, x_ref, o_ref):
    """One grid step = one (sample, feature-tile) block.

    rand_ref: SMEM int32 (B,), uniform bits in [0, 2^24) (scalar-prefetched).
    """
    b = pl.program_id(0)
    # uniform [0, 1) for this sample, computed in f32 regardless of x.dtype.
    u = rand_ref[b].astype(jnp.float32) * (1.0 / float(1 << 24))
    # random_tensor = floor(keep_prob + u)  -> 0.0 or 1.0 (Bernoulli(keep_prob))
    mask = jnp.floor(keep_prob + u)
    scale = mask * (1.0 / keep_prob)  # 0 or 1/keep_prob, f32 scalar
    o_ref[...] = (x_ref[...].astype(jnp.float32) * scale).astype(o_ref.dtype)


def drop_path(x, key, drop_prob, training=True):
    """Pallas implementation of DropPath.forward (per-sample stochastic depth)."""
    if drop_prob == 0.0 or not training:
        return x
    keep_prob = 1.0 - drop_prob

    B = x.shape[0]
    F = math.prod(x.shape[1:])

    # Lane-dense layout: (B, R_pad, 128). Tile the row axis in blocks that are
    # either the full extent or a multiple of 8 sublanes (satisfies the (8,128)
    # block constraint) and keep per-buffer tiles around ~1 MiB.
    r_total = pl.cdiv(F, _LANES)
    if r_total <= _MAX_TILE_ROWS:
        r_tile = r_total            # block == full dim: always legal
    else:
        r_tile = _MAX_TILE_ROWS     # multiple of 8
    num_tiles = pl.cdiv(r_total, r_tile)
    r_pad = num_tiles * r_tile
    f_pad = r_pad * _LANES

    x_flat = x.reshape(B, F)
    if f_pad != F:
        x_flat = jnp.pad(x_flat, ((0, 0), (0, f_pad - F)))
    x3 = x_flat.reshape(B, r_pad, _LANES)

    # Glue: draw B per-sample uniform bits (same role as torch.rand per sample).
    rand_bits = jax.random.randint(key, (B,), 0, 1 << 24, dtype=jnp.int32)

    kernel = functools.partial(_drop_path_kernel, float(keep_prob))
    out3 = pl.pallas_call(
        kernel,
        out_shape=jax.ShapeDtypeStruct((B, r_pad, _LANES), x.dtype),
        grid_spec=pltpu.PrefetchScalarGridSpec(
            num_scalar_prefetch=1,
            grid=(B, num_tiles),
            in_specs=[
                pl.BlockSpec((1, r_tile, _LANES), lambda b, t, rand: (b, t, 0)),
            ],
            out_specs=pl.BlockSpec((1, r_tile, _LANES), lambda b, t, rand: (b, t, 0)),
        ),
        compiler_params=pltpu.CompilerParams(
            dimension_semantics=("parallel", "parallel"),
        ),
        # NOTE: input/output aliasing (in-place scaling) is intentionally not
        # used here so the caller's x stays valid after the call; enable
        # input_output_aliases={1: 0} when x is dead after this op.
    )(rand_bits, x3)

    out_flat = out3.reshape(B, f_pad)
    if f_pad != F:
        out_flat = out_flat[:, :F]
    return out_flat.reshape(x.shape)


if __name__ == "__main__":
    key = jax.random.PRNGKey(0)
    k_x, k_drop = jax.random.split(key)

    B, C, H, W = 2, 4, 16, 16
    x = jax.random.normal(k_x, (B, C, H, W), dtype=jnp.float32)
    drop_prob = 0.25
    keep_prob = 1.0 - drop_prob

    out = drop_path(x, k_drop, drop_prob, training=True)
    out = jax.block_until_ready(out)

    # Pure-JAX reference with the exact same random draws / semantics.
    rand_bits = jax.random.randint(k_drop, (B,), 0, 1 << 24, dtype=jnp.int32)
    u = rand_bits.astype(jnp.float32) * (1.0 / float(1 << 24))
    mask = jnp.floor(keep_prob + u).reshape(B, 1, 1, 1)
    ref = x / keep_prob * mask

    assert out.shape == x.shape and out.dtype == x.dtype
    assert jnp.allclose(out, ref, atol=1e-6, rtol=1e-6)

    # Non-multiple-of-128 feature size exercises the padding path.
    x_odd = jax.random.normal(k_x, (2, 3, 7, 9), dtype=jnp.float32)
    out_odd = jax.block_until_ready(drop_path(x_odd, k_drop, drop_prob, training=True))
    ref_odd = x_odd / keep_prob * mask
    assert jnp.allclose(out_odd, ref_odd, atol=1e-6, rtol=1e-6)

    # Eval / drop_prob == 0 path is identity.
    out_eval = drop_path(x, k_drop, drop_prob, training=False)
    assert jnp.array_equal(out_eval, x)

    print("KERNEL_OK")
</pallas_src>

<mosaic_0001>
module attributes {stable_mosaic.version = 11 : i64} {
  func.func @_drop_path_kernel(%arg0: i32, %arg1: i32, %arg2: memref<2xi32, #tpu.memory_space<smem>>, %arg3: memref<1x8x128xf32, #tpu.memory_space<vmem>>, %arg4: memref<1x8x128xf32, #tpu.memory_space<vmem>>) attributes {dimension_semantics = [#tpu.dimension_semantics<parallel>, #tpu.dimension_semantics<parallel>], iteration_bounds = array<i64: 2, 1>, scalar_prefetch = 1 : i64, scratch_operands = 0 : i64, tpu.core_type = #tpu.core_type<tc>, window_params = [{transform_indices = @transform_0, window_bounds = array<i64: 1, 8, 128>}, {transform_indices = @transform_1, window_bounds = array<i64: 1, 8, 128>}]} {
    %0 = arith.index_cast %arg0 : i32 to index
    %1 = memref.load %arg2[%0] : memref<2xi32, #tpu.memory_space<smem>>
    %2 = arith.sitofp %1 : i32 to f32
    %cst = arith.constant 5.96046448E-8 : f32
    %3 = arith.mulf %2, %cst : f32
    %cst_0 = arith.constant 7.500000e-01 : f32
    %4 = arith.addf %cst_0, %3 : f32
    %5 = math.floor %4 : f32
    %cst_1 = arith.constant 1.33333337 : f32
    %6 = arith.mulf %5, %cst_1 : f32
    %c0 = arith.constant 0 : index
    %c0_2 = arith.constant 0 : index
    %c0_3 = arith.constant 0 : index
    %7 = vector.load %arg3[%c0, %c0_2, %c0_3] : memref<1x8x128xf32, #tpu.memory_space<vmem>>, vector<1x8x128xf32>
    %8 = vector.broadcast %6 : f32 to vector<1x8x128xf32>
    %9 = arith.mulf %7, %8 : vector<1x8x128xf32>
    %c0_4 = arith.constant 0 : index
    %c0_5 = arith.constant 0 : index
    %c0_6 = arith.constant 0 : index
    %10 = vector.load %arg4[%c0_4, %c0_5, %c0_6] : memref<1x8x128xf32, #tpu.memory_space<vmem>>, vector<1x8x128xf32>
    tpu.vector_store %arg4[%c0_4, %c0_5, %c0_6], %9 {strides = array<i32>} : memref<1x8x128xf32, #tpu.memory_space<vmem>>, vector<1x8x128xf32>,
    return
  }
  func.func @transform_0(%arg0: i32, %arg1: i32, %arg2: memref<2xi32, #tpu.memory_space<smem>>) -> (i32, i32, i32) {
    %c0_i32 = arith.constant 0 : i32
    %c0_i32_0 = arith.constant 0 : i32
    return %arg0, %arg1, %c0_i32 : i32, i32, i32
  }
  func.func @transform_1(%arg0: i32, %arg1: i32, %arg2: memref<2xi32, #tpu.memory_space<smem>>) -> (i32, i32, i32) {
    %c0_i32 = arith.constant 0 : i32
    %c0_i32_0 = arith.constant 0 : i32
    return %arg0, %arg1, %c0_i32 : i32, i32, i32
  }
}

</mosaic_0001>

<bundles_post_ra>
// kernel: tpu_custom_call.1
= control target key start
LH: loop header
LB: loop body
LE: loop exit
PB: predicated region body
PF: predicated region fallthrough
CT: control target
= control target key end

     0   :  { %s664_s0 = inlined_call_operand.hbm [shape: s32[2], index: 0, kind: input, shape index: {}]   ;;  %s665_s1 = inlined_call_operand.hbm [shape: f32[2,8,128], index: 1, kind: input, shape index: {}]   ;;  %s666_s2 = inlined_call_operand.hbm [shape: f32[2,8,128], index: 2, kind: output, shape index: {}]  }
   0x1   :  { %s335_s11 = scalar_lea.hbm %s664_s0, 16 }
   0x2   :  { %p336_p0 = scmp.ne.s32.totalorder %s664_s0, %s335_s11  ;;  %p339_p1 = scmp.lt.u32.totalorder %s335_s11, %s664_s0 }
   0x4   :  { %p341_p2 = pnand %p339_p1, %p336_p0 }
   0x6   :  { %344 = shalt.err (!%p341_p2)  }
   0x7   :  { %s461_s16 = smov [#allocation3]  }
   0x8   :  { %8 = dma.hbm_to_smem %s664_s0, 16, %s461_s16, [#allocation2] }
   0x9   :  { %427 = dma.done.wait [#allocation2], 16 }
   0xa   :  { %428 = vsyncadd [#allocation2], 4294967280 }
   0xb   :  { %10 = sfence }
   0xc   :  { %11 = vsyncpa [#allocation5], 0 }
   0xd   :  { %13 = vsyncpa [#allocation5 + $0x1], 0 }
   0xe   :  { %14 = vsyncpa [#allocation6], 0 }
   0xf   :  { %16 = vsyncpa [#allocation6 + $0x1], 0  ;;  %s491_s19 = smov 0   ;;  %s493_s20 = smov 0  }
  0x10   :  { %s495_s21 = smov 0   ;;  %s497_s22 = smov 0  }
  0x11   :  { %s499_s23 = smov 0   ;;  %s501_s24 = smov 0  }
  0x12 LB: > { %s259_s0 = sadd.s32 4294967295, %s459_s24   ;;  %s260_s25 = sadd.s32 4294967294, %s459_s24   ;;  %s459_s24 = sphi %s501_s24, %s22_s24   ;;  %s455_s23 = sphi %s499_s23, %s682_s23   ;;  %s451_s22 = sphi %s497_s22, %s681_s22   ;;  %s447_s21 = sphi %s495_s21, %s680_s21   ;;  %s443_s20 = sphi %s493_s20, %s679_s20   ;;  %s439_s19 = sphi %s491_s19, %s678_s19  }
  0x13   : > { %s34_s26 = sadd.s32 1, %s455_s23  ;;  %s43_s27 = sadd.s32 1, %s447_s21 }
  0x14   : > { %p36_p3 = scmp.ge.s32.totalorder %s34_s26, 2  ;;  %p50_p4 = scmp.ne.s32.totalorder %s447_s21, %s443_s20 }
  0x15   : > { %p51_p5 = scmp.eq.s32.totalorder %s459_s24, 0  ;;  %p56_p6 = scmp.ne.s32.totalorder %s443_s20, %s439_s19 }
  0x16   : > { %s684_s26 = smov (%p36_p3, %s34_s26), 0  ;;  %p57_p8 = scmp.eq.s32.totalorder %s259_s0, 0 }
  0x17   : > { %p532_p7 = por %p51_p5, %p50_p4  ;;  %s38_s29 = ssub.s32 %s455_s23, %s684_s26 }
  0x18   : > { %p82_p9 = scmp.eq.s32.totalorder %s259_s0, 1  ;;  %p41_p10 = scmp.eq.s32.totalorder %s38_s29, 0 }
  0x19   : > { %p538_p11 = por %p57_p8, %p56_p6  ;;  %p88_p13 = scmp.eq.s32.totalorder %s260_s25, 1 }
  0x1a   : > { %p542_p12 = por %p82_p9, %p50_p4  ;;  %p284_p2 = scmp.lt.s32.totalorder %s459_s24, 2 }
  0x1b   : > { %s547_s4 = scalar_select %p41_p10, %s447_s21, %s43_s27  }
  0x1c   : > { %s670_s3 = scalar_select %p542_p12, 1, 0 }
  0x1d   : > { %p549_p0 = por %p88_p13, %p56_p6  ;;  %s108_s6 = sand.u32 1, %s447_s21  }
  0x1e   : > { %s263_s7 = sshll.u32 %s108_s6, 3  ;;  %s264_s8 = sshll.u32 %s455_s23, 7 }
  0x1f   : > { %s671_s5 = scalar_select %p549_p0, 1, 0 }
  0x20   : > { %s560_s11 = scalar_lea.hbm %s665_s1, %s264_s8  ;;  %s112_s12 = scalar_lea.vmem [#allocation4], %s263_s7 }
  0x21   : > { %s120_s13 = sshll.u32 %s112_s12, 4  ;;  %p566_p3 = pnand %p284_p2, %p532_p7  ;;  %s562_s13 = int_to_ptr.vmem [resolvable:$true] %s120_s13 }
  0x22   : > { %s109_s15 = scalar_lea.sflag [#allocation5], %s108_s6  ;;  %s345_s16 = scalar_lea.hbm %s560_s11, 128 }
  0x23   : > { %p346_p6 = scmp.ne.s32.totalorder %s560_s11, %s345_s16  ;;  %p347_p8 = pneg %p566_p3 }
  0x24   : > { %s350_s0 = scalar_lea.hbm %s665_s1, 256  ;;  %p351_p7 = scmp.lt.u32.totalorder %s560_s11, %s665_s1 }
  0x25   : > { %p348_p9 = pnand %p347_p8, %p346_p6  ;;  %p352_p13 = scmp.lt.u32.totalorder %s350_s0, %s345_s16 }
  0x26   : > { %p354_p1 = scmp.lt.u32.totalorder %s345_s16, %s560_s11 }
  0x27   : > { %p349_p10 = pneg %p348_p9  ;;  %p353_p2 = por %p352_p13, %p351_p7 }
  0x29   : > { %p355_p4 = por %p354_p1, %p353_p2 }
  0x2b   : > { %p356_p5 = pnand %p355_p4, %p349_p10 }
  0x2d   : > { %359 = shalt.err (!%p356_p5)
}
  0x2e   : > { %s360_s28 = scalar_lea.vmem %s562_s13, 128  ;;  %s462_s29 = smov [#allocation4]  }
  0x2f   : > { %p361_p6 = scmp.ne.s32.totalorder %s562_s13, %s360_s28  ;;  %s365_s6 = sshll.u32 %s462_s29, 4  ;;  %s366_s6 = int_to_ptr.vmem [resolvable:$false] %s365_s6 }
  0x30   : > { %s367_s7 = scalar_lea.vmem %s366_s6, 256  ;;  %p368_p12 = scmp.lt.s32.totalorder %s562_s13, %s366_s6 }
  0x31   : > { %p363_p9 = pnand %p361_p6, %p347_p8  ;;  %p369_p7 = scmp.lt.s32.totalorder %s367_s7, %s360_s28 }
  0x33   : > { %p364_p0 = pneg %p363_p9  ;;  %p370_p13 = por %p369_p7, %p368_p12 }
  0x35   : > { %p371_p1 = pnand %p370_p13, %p364_p0 }
  0x37   : > { %374 = shalt.err (!%p371_p1)
}
  0x38   : > { %279 = dma.hbm_to_vmem [thread:$0]  (!%p566_p3), %s560_s11, 128, %s562_s13, %s109_s15  }
  0x39   : > { %p673_p4 = scmp.lt.s32.totalorder %s459_s24, 3  ;;  %p674_p5 = scmp.ge.s32.totalorder %s459_s24, 1 }
  0x3b   : > { %p126_p8 = pnand %p674_p5, %p673_p4 }
  0x3c   : > { %s602_s8 = sand.u32 (!%p126_p8), 1, %s443_s20  }
  0x3d   : > { %129 = sbr.rel (%p126_p8) target bundleno = 101 (0x65), region = 24  ;;  %s266_s9 = sshll.u32 (!%p126_p8), %s602_s8, 3 }
  0x3e   : > { %s132_s10 = scalar_lea.sflag (!%p126_p8), [#allocation5], %s602_s8  ;;  %s135_s12 = scalar_lea.vmem (!%p126_p8), [#allocation4], %s266_s9 }
  0x44   : > { %430 = dma.done.wait (%p538_p11), %s132_s10, 128  }
  0x45   : > { %432 = vsyncadd (%p538_p11), %s132_s10, 4294967168  ;;  %s154_s11 = sld [smem:[#allocation3 + %s451_s22]]  ;;  %s153_s17 = scalar_lea.vmem [#allocation7], %s266_s9  ;;  %v160_v0 = vld [vmem:[%s135_s12] sm:$0xff] }
  0x46   : > { %s179_s18 = sshll.u32 %s153_s17, 4  ;;  %s269_s25 = sshll.u32 %s451_s22, 7  ;;  %s612_s18 = int_to_ptr.vmem [resolvable:$true] %s179_s18 }
  0x47   : > { %s617_s28 = scalar_lea.hbm %s666_s2, %s269_s25  ;;  %s165_s29 = scalar_lea.sflag [#allocation6], %s602_s8 }
  0x48   : > { %s375_s6 = scalar_lea.vmem %s612_s18, 128  ;;  %p675_p12 = scmp.ne.s32.totalorder %s670_s3, 0 }
  0x49   : > { %p376_p11 = scmp.ne.s32.totalorder %s612_s18, %s375_s6  ;;  %s463_s22 = smov [#allocation7]  }
  0x4a   : > { %s379_s7 = sshll.u32 %s463_s22, 4  ;;  %s380_s7 = int_to_ptr.vmem [resolvable:$false] %s379_s7 }
  0x4b   : > { %s155_s13 = scvt.s32.f32 %s154_s11  ;;  %p377_p0 = pnand %p376_p11, %p675_p12 }
  0x4c   : > { %s381_s9 = scalar_lea.vmem %s380_s7, 256  ;;  %p382_p10 = scmp.lt.s32.totalorder %s612_s18, %s380_s7 }
  0x4d   : > { %s156_s14 = smul.f32 5.9604645e-08, %s155_s13  ;;  %p378_p3 = pneg %p377_p0 }
  0x4e   : > { %p383_p2 = scmp.lt.s32.totalorder %s381_s9, %s375_s6 }
  0x4f   : > { %s157_s15 = sadd.f32 0.75, %s156_s14 }
  0x50   : > { %p384_p6 = por %p383_p2, %p382_p10 }
  0x51   : > { %s158_s16 = sfloor.f32 %s157_s15 }
  0x52   : > { %s159_s0 = smul.f32 1.3333334, %s158_s16  ;;  %p385_p9 = pnand %p384_p6, %p378_p3 }
  0x54   : > { %v161_v1 = vstv %s159_s0 }
  0x55   : > { %v162_v2 = vmul.f32 %v161_v1, %v160_v0 }
  0x57   : > { %163 = vst [vmem:[%s153_s17] sm:$0xff] %v162_v2 }
  0x58   : > { %388 = shalt.err (!%p385_p9)
}
  0x59   : > { %s389_s8 = scalar_lea.hbm %s617_s28, 128  ;;  %s393_s11 = scalar_lea.hbm %s666_s2, 256 }
  0x5a   : > { %p390_p7 = scmp.ne.s32.totalorder %s617_s28, %s389_s8  ;;  %p394_p4 = scmp.lt.u32.totalorder %s617_s28, %s666_s2 }
  0x5b   : > { %p395_p5 = scmp.lt.u32.totalorder %s393_s11, %s389_s8  ;;  %p397_p11 = scmp.lt.u32.totalorder %s389_s8, %s617_s28 }
  0x5c   : > { %p391_p13 = pnand %p390_p7, %p675_p12 }
  0x5d   : > { %p396_p8 = por %p395_p5, %p394_p4 }
  0x5e   : > { %p392_p1 = pneg %p391_p13 }
  0x5f   : > { %p398_p0 = por %p397_p11, %p396_p8 }
  0x61   : > { %p399_p3 = pnand %p398_p0, %p392_p1 }
  0x63   : > { %402 = shalt.err (!%p399_p3)
}
  0x64   : > { %274 = dma.vmem_to_hbm [thread:$0]  (%p675_p12), %s612_s18, 128, %s617_s28, %s165_s29  }
  0x65 PF: > { %s191_s15 = sand.u32 1, %s439_s19   ;;  %p676_p10 = scmp.ne.s32.totalorder %s671_s5, 0 }
  0x66   : > { %p677_p2 = scmp.ge.s32.totalorder %s459_s24, 2  ;;  %s192_s16 = scalar_lea.sflag [#allocation6], %s191_s15 }
  0x68   : > { %p281_p6 = pnand %p677_p2, %p676_p10 }
  0x6a   : > { %434 = dma.done.wait (!%p281_p6), %s192_s16, 128  }
  0x6b   : > { %436 = vsyncadd (!%p281_p6), %s192_s16, 4294967168  ;;  %s22_s24 = sadd.s32 1, %s459_s24   ;;  %s678_s19 = smov %s443_s20 }
  0x6c   : > { %p19_p9 = scmp.ge.s32.totalorder %s22_s24, 4   ;;  %s679_s20 = smov %s447_s21 }
  0x6d   : > { %s680_s21 = smov %s547_s4  ;;  %s681_s22 = smov %s455_s23 }
  0x6e   : > { %s682_s23 = smov %s684_s26  ;;  %21 = sbr.rel (!%p19_p9) target bundleno = 18 (0x12), region = 69 }
  0x75   :  { %197 = vsyncpa [#allocation5], 1 }
  0x76   :  { %199 = vsyncpa [#allocation5 + $0x1], 1 }
  0x77   :  { %200 = vsyncpa [#allocation6], 1 }
  0x78   :  { %202 = vsyncpa [#allocation6 + $0x1], 1 }

</bundles_post_ra>
